<compile_context>
chip_gen: v7x
topology: tpu7x:2x2x1
jax: 0.10.0
libtpu: 0.0.40
codegen_flags: <defaults>
</compile_context>

<pallas_src>
import math

import jax
import jax.numpy as jnp
from jax.experimental import pallas as pl
from jax.experimental.pallas import tpu as pltpu

_EPS = 1e-7
_N_CHAN = 11           # 4 pred logits, 2 anchor wh, 4 target box, 1 weight
_CAND_ROW_TILE = 8     # candidate rows (of 128 lanes) per grid step
_BCE_ROW_TILE = 512    # (512,128) f32 = 256 KiB per input block
_VMEM_LIMIT = 32 * 1024 * 1024


def _round_up(v, m):
    return ((v + m - 1) // m) * m


# --------------------------------------------------------------------------- #
# Fused candidate kernel: decode + CIoU + masked (1-iou) reduction
# --------------------------------------------------------------------------- #
def _atan_pos(x):
    """atan(x) for x >= 0 (Cephes range reduction + poly, |err| ~1e-7).

    Pure VPU ops (mul/add/div/select) -> guaranteed Mosaic lowering; torch.atan
    has no direct Pallas primitive.
    """
    t3 = 2.414213562373095          # tan(3*pi/8)
    t1 = 0.4142135623730950         # tan(pi/8)
    big = x > t3
    mid = jnp.logical_and(x > t1, jnp.logical_not(big))
    x_big = -1.0 / jnp.maximum(x, 1e-30)
    x_mid = (x - 1.0) / (x + 1.0)
    xr = jnp.where(big, x_big, jnp.where(mid, x_mid, x))
    y0 = jnp.where(big, jnp.float32(math.pi / 2),
                   jnp.where(mid, jnp.float32(math.pi / 4), jnp.float32(0.0)))
    z = xr * xr
    p = ((((8.05374449538e-2 * z - 1.38776856032e-1) * z
           + 1.99777106478e-1) * z - 3.33329491539e-1) * z) * xr + xr
    return y0 + p


def _ciou_lbox_kernel(c_ref, iou_ref, lbox_ref, acc_ref):
    """c_ref: (11, TR, 128) candidate channels; iou_ref: (TR, 128) clamped CIoU;
    lbox_ref: (1, 1) sum over all steps of (1 - ciou) * weight."""
    @pl.when(pl.program_id(0) == 0)
    def _():
        acc_ref[...] = jnp.zeros_like(acc_ref)

    px = jax.nn.sigmoid(c_ref[0]) * 2.0 - 0.5
    py = jax.nn.sigmoid(c_ref[1]) * 2.0 - 0.5
    pw = (jax.nn.sigmoid(c_ref[2]) * 2.0) ** 2 * c_ref[4]
    ph = (jax.nn.sigmoid(c_ref[3]) * 2.0) ** 2 * c_ref[5]
    tx = c_ref[6]
    ty = c_ref[7]
    tw = c_ref[8]
    th = c_ref[9]
    wgt = c_ref[10]

    b1x1, b1x2 = px - pw * 0.5, px + pw * 0.5
    b1y1, b1y2 = py - ph * 0.5, py + ph * 0.5
    b2x1, b2x2 = tx - tw * 0.5, tx + tw * 0.5
    b2y1, b2y2 = ty - th * 0.5, ty + th * 0.5

    inter = (jnp.maximum(jnp.minimum(b1x2, b2x2) - jnp.maximum(b1x1, b2x1), 0.0) *
             jnp.maximum(jnp.minimum(b1y2, b2y2) - jnp.maximum(b1y1, b2y1), 0.0))
    w1, h1 = b1x2 - b1x1, b1y2 - b1y1 + _EPS
    w2, h2 = b2x2 - b2x1, b2y2 - b2y1 + _EPS
    union = w1 * h1 + w2 * h2 - inter + _EPS
    iou = inter / union

    cw = jnp.maximum(b1x2, b2x2) - jnp.minimum(b1x1, b2x1)
    ch = jnp.maximum(b1y2, b2y2) - jnp.minimum(b1y1, b2y1)
    c2 = cw * cw + ch * ch + _EPS
    rho2 = ((b2x1 + b2x2 - b1x1 - b1x2) ** 2 +
            (b2y1 + b2y2 - b1y1 - b1y2) ** 2) * 0.25

    v = (4.0 / (math.pi ** 2)) * (_atan_pos(w2 / h2) - _atan_pos(w1 / h1)) ** 2
    # alpha is computed under torch.no_grad() in the reference; forward value
    # is identical (this loss is used forward-only here).
    alpha = v / (v - iou + (1.0 + _EPS))
    ciou = iou - (rho2 / c2 + v * alpha)

    iou_ref[...] = jnp.maximum(ciou, 0.0)          # detached/clamped obj target
    part = jnp.sum(jnp.sum((1.0 - ciou) * wgt, axis=1, keepdims=True),
                   axis=0, keepdims=True)
    acc_ref[...] += part

    @pl.when(pl.program_id(0) == pl.num_programs(0) - 1)
    def _():
        lbox_ref[...] = acc_ref[...]


def _ciou_lbox_pallas(cand):
    """cand: (11, R, 128) f32, R a multiple of _CAND_ROW_TILE.
    Returns (clamped_iou (R,128), lbox_sum (1,1))."""
    _, R, _ = cand.shape
    steps = R // _CAND_ROW_TILE
    iou, lbox = pl.pallas_call(
        _ciou_lbox_kernel,
        out_shape=(jax.ShapeDtypeStruct((R, 128), jnp.float32),
                   jax.ShapeDtypeStruct((1, 1), jnp.float32)),
        grid=(steps,),
        in_specs=[pl.BlockSpec((_N_CHAN, _CAND_ROW_TILE, 128),
                               lambda i: (0, i, 0))],
        out_specs=[pl.BlockSpec((_CAND_ROW_TILE, 128), lambda i: (i, 0)),
                   pl.BlockSpec((1, 1), lambda i: (0, 0))],
        scratch_shapes=[pltpu.VMEM((1, 1), jnp.float32)],
        compiler_params=pltpu.CompilerParams(
            dimension_semantics=("arbitrary",),
            vmem_limit_bytes=_VMEM_LIMIT),
    )(cand)
    return iou, lbox


# --------------------------------------------------------------------------- #
# Fused objectness BCE kernel (all layers, weighted, tiled reduction)
# --------------------------------------------------------------------------- #
def _bce_obj_kernel(x_ref, t_ref, w_ref, o_ref, acc_ref):
    """Weighted sum of numerically-stable BCE-with-logits (pos_weight=1).
    x_ref/t_ref: (TR,128); w_ref: (TR,1) per-row weight (balance/numel).
    Padding uses logit=-100, target=0 -> exact zero contribution (no mask)."""
    @pl.when(pl.program_id(1) == 0)
    def _():
        acc_ref[...] = jnp.zeros_like(acc_ref)

    x = x_ref[...]
    t = t_ref[...]
    wr = w_ref[...]
    loss = (jnp.maximum(x, 0.0) - x * t + jnp.log(1.0 + jnp.exp(-jnp.abs(x)))) * wr
    acc_ref[...] += jnp.sum(loss, axis=0, keepdims=True)     # (1,128) per-lane

    @pl.when(pl.program_id(1) == pl.num_programs(1) - 1)
    def _():
        o_ref[...] = acc_ref[...].reshape(1, 1, 128)


def _fused_obj_bce_pallas(obj_logits, obj_targets, obj_scales):
    """One weighted BCE reduction over all layers.
    Each layer i contributes scale_i * sum(BCE(x_i, t_i)) = balance_i * mean BCE."""
    xs, ts, ws = [], [], []
    for xl, tl, s in zip(obj_logits, obj_targets, obj_scales):
        n = xl.shape[0]
        rows = (n + 127) // 128
        pad = rows * 128 - n
        xs.append(jnp.pad(xl.astype(jnp.float32), (0, pad),
                          constant_values=-100.0).reshape(rows, 128))
        ts.append(jnp.pad(tl.astype(jnp.float32), (0, pad)).reshape(rows, 128))
        ws.append(jnp.full((rows, 1), s, jnp.float32))
    x2 = jnp.concatenate(xs, axis=0)
    t2 = jnp.concatenate(ts, axis=0)
    w2 = jnp.concatenate(ws, axis=0)

    r0 = x2.shape[0]
    if r0 <= _BCE_ROW_TILE:
        tr = _round_up(r0, 8)
        cores = 1
    else:
        tr = _BCE_ROW_TILE
        cores = 2                       # split across v7x's two TensorCores
    rp = _round_up(r0, tr * cores)
    if rp != r0:
        extra = rp - r0
        x2 = jnp.concatenate([x2, jnp.full((extra, 128), -100.0, jnp.float32)], 0)
        t2 = jnp.concatenate([t2, jnp.zeros((extra, 128), jnp.float32)], 0)
        w2 = jnp.concatenate([w2, jnp.zeros((extra, 1), jnp.float32)], 0)
    steps = rp // (tr * cores)

    out = pl.pallas_call(
        _bce_obj_kernel,
        out_shape=jax.ShapeDtypeStruct((cores, 1, 128), jnp.float32),
        grid=(cores, steps),
        in_specs=[pl.BlockSpec((tr, 128), lambda c, k: (c * steps + k, 0)),
                  pl.BlockSpec((tr, 128), lambda c, k: (c * steps + k, 0)),
                  pl.BlockSpec((tr, 1), lambda c, k: (c * steps + k, 0))],
        out_specs=pl.BlockSpec((1, 1, 128), lambda c, k: (c, 0, 0)),
        scratch_shapes=[pltpu.VMEM((1, 128), jnp.float32)],
        compiler_params=pltpu.CompilerParams(
            dimension_semantics=("parallel", "arbitrary"),
            vmem_limit_bytes=_VMEM_LIMIT),
    )(x2, t2, w2)
    return jnp.sum(out)


# --------------------------------------------------------------------------- #
# DetectorLoss (JAX glue + fused Pallas hot paths)
# --------------------------------------------------------------------------- #
class DetectorLossJax:
    def __init__(self, anchors_cfg):
        self.nc = 1
        self.na = len(anchors_cfg[0]) // 2
        self.nl = len(anchors_cfg)
        strides = [8, 16, 32, 64]
        anc = [jnp.asarray(anchors_cfg[i], jnp.float32) / strides[i]
               for i in range(self.nl)]
        self.anchors = jnp.concatenate(anc, axis=0).reshape(self.nl, self.na, 2)
        self.balance = [4.0, 1.0, 0.25, 0.06, 0.02]
        self.box_weight = 0.05
        self.cls_weight = 0.5
        self.obj_weight = 1.0

    # ------------------------------------------------------------------ #
    # build_targets: static-shape (masked) version of the PyTorch code.
    # The data-dependent boolean compaction (t[mask]) is replaced by keeping
    # all 5*na*nt candidates plus a validity mask (only order-independent ops
    # consume the result, so semantics match).
    # ------------------------------------------------------------------ #
    def build_targets(self, x, targets):
        na, nt = self.na, targets.shape[0]
        g = 0.5
        ai = jnp.broadcast_to(jnp.arange(na, dtype=jnp.float32)[:, None], (na, nt))
        t_all = jnp.concatenate(
            [jnp.broadcast_to(targets[None], (na, nt, 6)), ai[:, :, None]], axis=2)
        off = jnp.array([[0., 0.], [1., 0.], [0., 1.], [-1., 0.], [0., -1.]],
                        jnp.float32) * g
        out = []
        for i in range(self.nl):
            anchor = self.anchors[i]                        # (na, 2)
            _, _, H, W, _ = x[i].shape
            gain = jnp.array([1., 1., W, H, W, H, 1.], jnp.float32)
            t = t_all * gain                                # (na, nt, 7)
            r = t[:, :, 4:6] / anchor[:, None, :]
            ratio_ok = jnp.max(jnp.maximum(r, 1.0 / r), axis=2) < 4.0
            tf = t.reshape(na * nt, 7)
            m1 = ratio_ok.reshape(na * nt)

            gxy = tf[:, 2:4]
            gxi = jnp.array([W, H], jnp.float32) - gxy
            jk = (gxy % 1.0 < g) & (gxy > 1.0)
            lm = (gxi % 1.0 < g) & (gxi > 1.0)
            sel = jnp.stack([jnp.ones_like(jk[:, 0]), jk[:, 0], jk[:, 1],
                             lm[:, 0], lm[:, 1]], axis=0)   # (5, na*nt)
            mask = (sel & m1[None, :]).reshape(5 * na * nt)

            tc = jnp.broadcast_to(tf[None], (5, na * nt, 7)).reshape(5 * na * nt, 7)
            offs = jnp.broadcast_to(off[:, None, :],
                                    (5, na * nt, 2)).reshape(5 * na * nt, 2)

            b_idx = tc[:, 0].astype(jnp.int32)
            gxy_c = tc[:, 2:4]
            gwh = tc[:, 4:6]
            gij = jnp.trunc(gxy_c - offs).astype(jnp.int32)   # matches .long()
            gi = gij[:, 0]
            gj = gij[:, 1]
            a_ids = tc[:, 6].astype(jnp.int32)
            gj_cl = jnp.clip(gj, 0, H - 1)
            gi_cl = jnp.clip(gi, 0, W - 1)
            tbox = jnp.concatenate([gxy_c - gij.astype(jnp.float32), gwh], axis=1)
            anc_sel = anchor[a_ids]
            out.append((b_idx, a_ids, gj_cl, gi_cl, tbox, anc_sel, mask))
        return out

    def __call__(self, x, targets):
        tgt = self.build_targets(x, targets)

        # ---- fused candidate path (all layers -> one pallas_call) -------- #
        p_cols, anc_cols, tb_cols, w_cols, ncands = [], [], [], [], []
        for i, pi in enumerate(x):
            b_idx, a_ids, gj, gi, tbox, anc_sel, mask = tgt[i]
            # data-dependent gather stays in XLA (per-candidate DMA in Pallas
            # would be slower at these sizes).
            p_sel = pi[b_idx, a_ids, gj, gi]                 # (ncand, 5+nc)
            maskf = mask.astype(jnp.float32)
            cnt = jnp.sum(maskf)
            p_cols.append(p_sel[:, :4])
            anc_cols.append(anc_sel)
            tb_cols.append(tbox)
            # weight = mask / count  ->  sum((1-iou)*w) == per-layer mean,
            # and == 0 automatically when the layer has no valid candidates.
            w_cols.append((maskf / jnp.maximum(cnt, 1.0))[:, None])
            ncands.append(b_idx.shape[0])
        total = sum(ncands)

        l_box = jnp.float32(0.0)
        iou_flat = None
        if total > 0:
            feat = jnp.concatenate(
                [jnp.concatenate(p_cols, axis=0),
                 jnp.concatenate(anc_cols, axis=0),
                 jnp.concatenate(tb_cols, axis=0),
                 jnp.concatenate(w_cols, axis=0)], axis=1)   # (total, 11)
            npad = _round_up(total, _CAND_ROW_TILE * 128)
            cand = jnp.pad(feat.T.astype(jnp.float32),
                           ((0, 0), (0, npad - total)))
            cand = cand.reshape(_N_CHAN, npad // 128, 128)
            iou2d, lbox11 = _ciou_lbox_pallas(cand)
            iou_flat = jax.lax.stop_gradient(iou2d.reshape(-1))  # detach + clamp(0)
            l_box = lbox11[0, 0]

        # ---- objectness BCE (all layers -> one pallas_call) -------------- #
        obj_logits, obj_targets, obj_scales = [], [], []
        off = 0
        for i, pi in enumerate(x):
            b_idx, a_ids, gj, gi, tbox, anc_sel, mask = tgt[i]
            B, na, H, W, _ = pi.shape
            t_obj = jnp.zeros((B, na, H, W), jnp.float32)
            if total > 0:
                iou_i = iou_flat[off:off + ncands[i]]
                b_sc = jnp.where(mask, b_idx, B)             # OOB sentinel -> drop
                t_obj = t_obj.at[b_sc, a_ids, gj, gi].set(iou_i, mode='drop')
            off += ncands[i]
            obj_logits.append(pi[..., 4].reshape(-1))
            obj_targets.append(t_obj.reshape(-1))
            obj_scales.append(self.balance[i] / float(B * na * H * W))
        l_obj = _fused_obj_bce_pallas(obj_logits, obj_targets, obj_scales)

        l_cls = jnp.float32(0.0)     # nc == 1: reference forward never adds cls loss
        batch_size = x[0].shape[0]
        loss = (l_box * self.box_weight + l_obj * self.obj_weight +
                l_cls * self.cls_weight)
        return (jnp.reshape(loss * batch_size, (1,)),
                jnp.stack([l_box, l_obj, l_cls]))


# --------------------------------------------------------------------------- #
if __name__ == "__main__":
    key = jax.random.PRNGKey(0)
    anchors_cfg = [[10, 13, 16, 30, 33, 23],
                   [30, 61, 62, 45, 59, 119],
                   [116, 90, 156, 198, 373, 326]]
    loss_fn = DetectorLossJax(anchors_cfg)

    B = 2
    na = 3
    no = 5 + 1                     # x, y, w, h, obj, cls (nc = 1)
    sizes = [(8, 8), (4, 4), (2, 2)]   # strides 8 / 16 / 32 on a 64x64 image

    keys = jax.random.split(key, len(sizes) + 2)
    x = [jax.random.normal(keys[i], (B, na, h, w, no), jnp.float32) * 0.5
         for i, (h, w) in enumerate(sizes)]

    nt = 8
    b_col = jax.random.randint(keys[-2], (nt, 1), 0, B).astype(jnp.float32)
    cls_col = jnp.zeros((nt, 1), jnp.float32)
    rnd = jax.random.uniform(keys[-1], (nt, 4), jnp.float32, 0.1, 0.9)
    xy = rnd[:, :2]
    wh = rnd[:, 2:] * 0.4 + 0.02
    targets = jnp.concatenate([b_col, cls_col, xy, wh], axis=1)   # (nt, 6)

    loss, parts = loss_fn(x, targets)
    jax.block_until_ready((loss, parts))
    print("KERNEL_OK")
</pallas_src>

<mosaic_0001>
module attributes {stable_mosaic.version = 11 : i64} {
  func.func @_ciou_lbox_kernel(%arg0: i32, %arg1: memref<11x8x128xf32, #tpu.memory_space<vmem>>, %arg2: memref<8x128xf32, #tpu.memory_space<vmem>>, %arg3: memref<1x1xf32, #tpu.memory_space<vmem>>, %arg4: memref<1x1xf32, #tpu.memory_space<vmem>>) attributes {dimension_semantics = [#tpu.dimension_semantics<arbitrary>], iteration_bounds = array<i64: 1>, scalar_prefetch = 0 : i64, scratch_operands = 1 : i64, tpu.core_type = #tpu.core_type<tc>, window_params = [{transform_indices = @transform_0, window_bounds = array<i64: 11, 8, 128>}, {transform_indices = @transform_1, window_bounds = array<i64: 8, 128>}, {pipeline_mode = #tpu.pipeline_mode<synchronous>, transform_indices = @transform_2, window_bounds = array<i64: 1, 1>}]} {
    %c0_i32 = arith.constant 0 : i32
    %0 = arith.cmpi eq, %arg0, %c0_i32 : i32
    %1 = arith.extui %0 : i1 to i32
    %c0_i32_0 = arith.constant 0 : i32
    %2 = arith.cmpi ne, %1, %c0_i32_0 : i32
    scf.if %2 {
      %cst_89 = arith.constant 0.000000e+00 : f32
      %237 = vector.broadcast %cst_89 : f32 to vector<1x1xf32>
      %c0_90 = arith.constant 0 : index
      %c0_91 = arith.constant 0 : index
      %238 = vector.load %arg4[%c0_90, %c0_91] : memref<1x1xf32, #tpu.memory_space<vmem>>, vector<1x1xf32>
      tpu.vector_store %arg4[%c0_90, %c0_91], %237 {strides = array<i32>} : memref<1x1xf32, #tpu.memory_space<vmem>>, vector<1x1xf32>,
    } else {
    }
    %c0 = arith.constant 0 : index
    %c0_1 = arith.constant 0 : index
    %c0_2 = arith.constant 0 : index
    %3 = vector.load %arg1[%c0, %c0_1, %c0_2] : memref<11x8x128xf32, #tpu.memory_space<vmem>>, vector<1x8x128xf32>
    %4 = vector.shape_cast %3 : vector<1x8x128xf32> to vector<8x128xf32>
    %5 = arith.negf %4 : vector<8x128xf32>
    %6 = math.exp %5 : vector<8x128xf32>
    %cst = arith.constant 1.000000e+00 : f32
    %7 = vector.broadcast %cst : f32 to vector<8x128xf32>
    %8 = arith.addf %7, %6 : vector<8x128xf32>
    %9 = arith.divf %7, %8 : vector<8x128xf32>
    %cst_3 = arith.constant 2.000000e+00 : f32
    %10 = vector.broadcast %cst_3 : f32 to vector<8x128xf32>
    %11 = arith.mulf %9, %10 : vector<8x128xf32>
    %cst_4 = arith.constant 5.000000e-01 : f32
    %12 = vector.broadcast %cst_4 : f32 to vector<8x128xf32>
    %13 = arith.subf %11, %12 : vector<8x128xf32>
    %c1 = arith.constant 1 : index
    %c0_5 = arith.constant 0 : index
    %c0_6 = arith.constant 0 : index
    %14 = vector.load %arg1[%c1, %c0_5, %c0_6] : memref<11x8x128xf32, #tpu.memory_space<vmem>>, vector<1x8x128xf32>
    %15 = vector.shape_cast %14 : vector<1x8x128xf32> to vector<8x128xf32>
    %16 = arith.negf %15 : vector<8x128xf32>
    %17 = math.exp %16 : vector<8x128xf32>
    %cst_7 = arith.constant 1.000000e+00 : f32
    %18 = vector.broadcast %cst_7 : f32 to vector<8x128xf32>
    %19 = arith.addf %18, %17 : vector<8x128xf32>
    %20 = arith.divf %18, %19 : vector<8x128xf32>
    %cst_8 = arith.constant 2.000000e+00 : f32
    %21 = vector.broadcast %cst_8 : f32 to vector<8x128xf32>
    %22 = arith.mulf %20, %21 : vector<8x128xf32>
    %cst_9 = arith.constant 5.000000e-01 : f32
    %23 = vector.broadcast %cst_9 : f32 to vector<8x128xf32>
    %24 = arith.subf %22, %23 : vector<8x128xf32>
    %c2 = arith.constant 2 : index
    %c0_10 = arith.constant 0 : index
    %c0_11 = arith.constant 0 : index
    %25 = vector.load %arg1[%c2, %c0_10, %c0_11] : memref<11x8x128xf32, #tpu.memory_space<vmem>>, vector<1x8x128xf32>
    %26 = vector.shape_cast %25 : vector<1x8x128xf32> to vector<8x128xf32>
    %27 = arith.negf %26 : vector<8x128xf32>
    %28 = math.exp %27 : vector<8x128xf32>
    %cst_12 = arith.constant 1.000000e+00 : f32
    %29 = vector.broadcast %cst_12 : f32 to vector<8x128xf32>
    %30 = arith.addf %29, %28 : vector<8x128xf32>
    %31 = arith.divf %29, %30 : vector<8x128xf32>
    %cst_13 = arith.constant 2.000000e+00 : f32
    %32 = vector.broadcast %cst_13 : f32 to vector<8x128xf32>
    %33 = arith.mulf %31, %32 : vector<8x128xf32>
    %34 = arith.mulf %33, %33 : vector<8x128xf32>
    %c4 = arith.constant 4 : index
    %c0_14 = arith.constant 0 : index
    %c0_15 = arith.constant 0 : index
    %35 = vector.load %arg1[%c4, %c0_14, %c0_15] : memref<11x8x128xf32, #tpu.memory_space<vmem>>, vector<1x8x128xf32>
    %36 = vector.shape_cast %35 : vector<1x8x128xf32> to vector<8x128xf32>
    %37 = arith.mulf %34, %36 : vector<8x128xf32>
    %c3 = arith.constant 3 : index
    %c0_16 = arith.constant 0 : index
    %c0_17 = arith.constant 0 : index
    %38 = vector.load %arg1[%c3, %c0_16, %c0_17] : memref<11x8x128xf32, #tpu.memory_space<vmem>>, vector<1x8x128xf32>
    %39 = vector.shape_cast %38 : vector<1x8x128xf32> to vector<8x128xf32>
    %40 = arith.negf %39 : vector<8x128xf32>
    %41 = math.exp %40 : vector<8x128xf32>
    %cst_18 = arith.constant 1.000000e+00 : f32
    %42 = vector.broadcast %cst_18 : f32 to vector<8x128xf32>
    %43 = arith.addf %42, %41 : vector<8x128xf32>
    %44 = arith.divf %42, %43 : vector<8x128xf32>
    %cst_19 = arith.constant 2.000000e+00 : f32
    %45 = vector.broadcast %cst_19 : f32 to vector<8x128xf32>
    %46 = arith.mulf %44, %45 : vector<8x128xf32>
    %47 = arith.mulf %46, %46 : vector<8x128xf32>
    %c5 = arith.constant 5 : index
    %c0_20 = arith.constant 0 : index
    %c0_21 = arith.constant 0 : index
    %48 = vector.load %arg1[%c5, %c0_20, %c0_21] : memref<11x8x128xf32, #tpu.memory_space<vmem>>, vector<1x8x128xf32>
    %49 = vector.shape_cast %48 : vector<1x8x128xf32> to vector<8x128xf32>
    %50 = arith.mulf %47, %49 : vector<8x128xf32>
    %c6 = arith.constant 6 : index
    %c0_22 = arith.constant 0 : index
    %c0_23 = arith.constant 0 : index
    %51 = vector.load %arg1[%c6, %c0_22, %c0_23] : memref<11x8x128xf32, #tpu.memory_space<vmem>>, vector<1x8x128xf32>
    %52 = vector.shape_cast %51 : vector<1x8x128xf32> to vector<8x128xf32>
    %c7 = arith.constant 7 : index
    %c0_24 = arith.constant 0 : index
    %c0_25 = arith.constant 0 : index
    %53 = vector.load %arg1[%c7, %c0_24, %c0_25] : memref<11x8x128xf32, #tpu.memory_space<vmem>>, vector<1x8x128xf32>
    %54 = vector.shape_cast %53 : vector<1x8x128xf32> to vector<8x128xf32>
    %c8 = arith.constant 8 : index
    %c0_26 = arith.constant 0 : index
    %c0_27 = arith.constant 0 : index
    %55 = vector.load %arg1[%c8, %c0_26, %c0_27] : memref<11x8x128xf32, #tpu.memory_space<vmem>>, vector<1x8x128xf32>
    %56 = vector.shape_cast %55 : vector<1x8x128xf32> to vector<8x128xf32>
    %c9 = arith.constant 9 : index
    %c0_28 = arith.constant 0 : index
    %c0_29 = arith.constant 0 : index
    %57 = vector.load %arg1[%c9, %c0_28, %c0_29] : memref<11x8x128xf32, #tpu.memory_space<vmem>>, vector<1x8x128xf32>
    %58 = vector.shape_cast %57 : vector<1x8x128xf32> to vector<8x128xf32>
    %c10 = arith.constant 10 : index
    %c0_30 = arith.constant 0 : index
    %c0_31 = arith.constant 0 : index
    %59 = vector.load %arg1[%c10, %c0_30, %c0_31] : memref<11x8x128xf32, #tpu.memory_space<vmem>>, vector<1x8x128xf32>
    %60 = vector.shape_cast %59 : vector<1x8x128xf32> to vector<8x128xf32>
    %cst_32 = arith.constant 5.000000e-01 : f32
    %61 = vector.broadcast %cst_32 : f32 to vector<8x128xf32>
    %62 = arith.mulf %37, %61 : vector<8x128xf32>
    %63 = arith.subf %13, %62 : vector<8x128xf32>
    %cst_33 = arith.constant 5.000000e-01 : f32
    %64 = vector.broadcast %cst_33 : f32 to vector<8x128xf32>
    %65 = arith.mulf %37, %64 : vector<8x128xf32>
    %66 = arith.addf %13, %65 : vector<8x128xf32>
    %cst_34 = arith.constant 5.000000e-01 : f32
    %67 = vector.broadcast %cst_34 : f32 to vector<8x128xf32>
    %68 = arith.mulf %50, %67 : vector<8x128xf32>
    %69 = arith.subf %24, %68 : vector<8x128xf32>
    %cst_35 = arith.constant 5.000000e-01 : f32
    %70 = vector.broadcast %cst_35 : f32 to vector<8x128xf32>
    %71 = arith.mulf %50, %70 : vector<8x128xf32>
    %72 = arith.addf %24, %71 : vector<8x128xf32>
    %cst_36 = arith.constant 5.000000e-01 : f32
    %73 = vector.broadcast %cst_36 : f32 to vector<8x128xf32>
    %74 = arith.mulf %56, %73 : vector<8x128xf32>
    %75 = arith.subf %52, %74 : vector<8x128xf32>
    %cst_37 = arith.constant 5.000000e-01 : f32
    %76 = vector.broadcast %cst_37 : f32 to vector<8x128xf32>
    %77 = arith.mulf %56, %76 : vector<8x128xf32>
    %78 = arith.addf %52, %77 : vector<8x128xf32>
    %cst_38 = arith.constant 5.000000e-01 : f32
    %79 = vector.broadcast %cst_38 : f32 to vector<8x128xf32>
    %80 = arith.mulf %58, %79 : vector<8x128xf32>
    %81 = arith.subf %54, %80 : vector<8x128xf32>
    %cst_39 = arith.constant 5.000000e-01 : f32
    %82 = vector.broadcast %cst_39 : f32 to vector<8x128xf32>
    %83 = arith.mulf %58, %82 : vector<8x128xf32>
    %84 = arith.addf %54, %83 : vector<8x128xf32>
    %85 = arith.minimumf %66, %78 : vector<8x128xf32>
    %86 = arith.maximumf %63, %75 : vector<8x128xf32>
    %87 = arith.subf %85, %86 : vector<8x128xf32>
    %cst_40 = arith.constant 0.000000e+00 : f32
    %88 = vector.broadcast %cst_40 : f32 to vector<8x128xf32>
    %89 = arith.maximumf %87, %88 : vector<8x128xf32>
    %90 = arith.minimumf %72, %84 : vector<8x128xf32>
    %91 = arith.maximumf %69, %81 : vector<8x128xf32>
    %92 = arith.subf %90, %91 : vector<8x128xf32>
    %cst_41 = arith.constant 0.000000e+00 : f32
    %93 = vector.broadcast %cst_41 : f32 to vector<8x128xf32>
    %94 = arith.maximumf %92, %93 : vector<8x128xf32>
    %95 = arith.mulf %89, %94 : vector<8x128xf32>
    %96 = arith.subf %66, %63 : vector<8x128xf32>
    %97 = arith.subf %72, %69 : vector<8x128xf32>
    %cst_42 = arith.constant 1.000000e-07 : f32
    %98 = vector.broadcast %cst_42 : f32 to vector<8x128xf32>
    %99 = arith.addf %97, %98 : vector<8x128xf32>
    %100 = arith.subf %78, %75 : vector<8x128xf32>
    %101 = arith.subf %84, %81 : vector<8x128xf32>
    %cst_43 = arith.constant 1.000000e-07 : f32
    %102 = vector.broadcast %cst_43 : f32 to vector<8x128xf32>
    %103 = arith.addf %101, %102 : vector<8x128xf32>
    %104 = arith.mulf %96, %99 : vector<8x128xf32>
    %105 = arith.mulf %100, %103 : vector<8x128xf32>
    %106 = arith.addf %104, %105 : vector<8x128xf32>
    %107 = arith.subf %106, %95 : vector<8x128xf32>
    %cst_44 = arith.constant 1.000000e-07 : f32
    %108 = vector.broadcast %cst_44 : f32 to vector<8x128xf32>
    %109 = arith.addf %107, %108 : vector<8x128xf32>
    %110 = arith.divf %95, %109 : vector<8x128xf32>
    %111 = arith.maximumf %66, %78 : vector<8x128xf32>
    %112 = arith.minimumf %63, %75 : vector<8x128xf32>
    %113 = arith.subf %111, %112 : vector<8x128xf32>
    %114 = arith.maximumf %72, %84 : vector<8x128xf32>
    %115 = arith.minimumf %69, %81 : vector<8x128xf32>
    %116 = arith.subf %114, %115 : vector<8x128xf32>
    %117 = arith.mulf %113, %113 : vector<8x128xf32>
    %118 = arith.mulf %116, %116 : vector<8x128xf32>
    %119 = arith.addf %117, %118 : vector<8x128xf32>
    %cst_45 = arith.constant 1.000000e-07 : f32
    %120 = vector.broadcast %cst_45 : f32 to vector<8x128xf32>
    %121 = arith.addf %119, %120 : vector<8x128xf32>
    %122 = arith.addf %75, %78 : vector<8x128xf32>
    %123 = arith.subf %122, %63 : vector<8x128xf32>
    %124 = arith.subf %123, %66 : vector<8x128xf32>
    %125 = arith.mulf %124, %124 : vector<8x128xf32>
    %126 = arith.addf %81, %84 : vector<8x128xf32>
    %127 = arith.subf %126, %69 : vector<8x128xf32>
    %128 = arith.subf %127, %72 : vector<8x128xf32>
    %129 = arith.mulf %128, %128 : vector<8x128xf32>
    %130 = arith.addf %125, %129 : vector<8x128xf32>
    %cst_46 = arith.constant 2.500000e-01 : f32
    %131 = vector.broadcast %cst_46 : f32 to vector<8x128xf32>
    %132 = arith.mulf %130, %131 : vector<8x128xf32>
    %133 = arith.divf %100, %103 : vector<8x128xf32>
    %cst_47 = arith.constant 2.41421366 : f32
    %134 = vector.broadcast %cst_47 : f32 to vector<8x128xf32>
    %135 = arith.cmpf ogt, %133, %134 : vector<8x128xf32>
    %cst_48 = arith.constant 0.414213568 : f32
    %136 = vector.broadcast %cst_48 : f32 to vector<8x128xf32>
    %137 = arith.cmpf ogt, %133, %136 : vector<8x128xf32>
    %cst_49 = arith.constant dense<true> : vector<8x128xi1>
    %138 = arith.xori %135, %cst_49 : vector<8x128xi1>
    %139 = arith.andi %137, %138 : vector<8x128xi1>
    %cst_50 = arith.constant 1.000000e-30 : f32
    %140 = vector.broadcast %cst_50 : f32 to vector<8x128xf32>
    %141 = arith.maximumf %133, %140 : vector<8x128xf32>
    %cst_51 = arith.constant -1.000000e+00 : f32
    %142 = vector.broadcast %cst_51 : f32 to vector<8x128xf32>
    %143 = arith.divf %142, %141 : vector<8x128xf32>
    %cst_52 = arith.constant 1.000000e+00 : f32
    %144 = vector.broadcast %cst_52 : f32 to vector<8x128xf32>
    %145 = arith.subf %133, %144 : vector<8x128xf32>
    %cst_53 = arith.constant 1.000000e+00 : f32
    %146 = vector.broadcast %cst_53 : f32 to vector<8x128xf32>
    %147 = arith.addf %133, %146 : vector<8x128xf32>
    %148 = arith.divf %145, %147 : vector<8x128xf32>
    %149 = arith.select %139, %148, %133 : vector<8x128xi1>, vector<8x128xf32>
    %150 = arith.select %135, %143, %149 : vector<8x128xi1>, vector<8x128xf32>
    %cst_54 = arith.constant 0.785398185 : f32
    %cst_55 = arith.constant 0.000000e+00 : f32
    %151 = vector.broadcast %cst_54 : f32 to vector<8x128xf32>
    %152 = vector.broadcast %cst_55 : f32 to vector<8x128xf32>
    %153 = arith.select %139, %151, %152 : vector<8x128xi1>, vector<8x128xf32>
    %cst_56 = arith.constant 1.57079637 : f32
    %154 = vector.broadcast %cst_56 : f32 to vector<8x128xf32>
    %155 = arith.select %135, %154, %153 : vector<8x128xi1>, vector<8x128xf32>
    %156 = arith.mulf %150, %150 : vector<8x128xf32>
    %cst_57 = arith.constant 0.0805374458 : f32
    %157 = vector.broadcast %cst_57 : f32 to vector<8x128xf32>
    %158 = arith.mulf %157, %156 : vector<8x128xf32>
    %cst_58 = arith.constant 0.138776854 : f32
    %159 = vector.broadcast %cst_58 : f32 to vector<8x128xf32>
    %160 = arith.subf %158, %159 : vector<8x128xf32>
    %161 = arith.mulf %160, %156 : vector<8x128xf32>
    %cst_59 = arith.constant 0.199777111 : f32
    %162 = vector.broadcast %cst_59 : f32 to vector<8x128xf32>
    %163 = arith.addf %161, %162 : vector<8x128xf32>
    %164 = arith.mulf %163, %156 : vector<8x128xf32>
    %cst_60 = arith.constant 0.333329499 : f32
    %165 = vector.broadcast %cst_60 : f32 to vector<8x128xf32>
    %166 = arith.subf %164, %165 : vector<8x128xf32>
    %167 = arith.mulf %166, %156 : vector<8x128xf32>
    %168 = arith.mulf %167, %150 : vector<8x128xf32>
    %169 = arith.addf %168, %150 : vector<8x128xf32>
    %170 = arith.addf %155, %169 : vector<8x128xf32>
    %171 = arith.divf %96, %99 : vector<8x128xf32>
    %cst_61 = arith.constant 2.41421366 : f32
    %172 = vector.broadcast %cst_61 : f32 to vector<8x128xf32>
    %173 = arith.cmpf ogt, %171, %172 : vector<8x128xf32>
    %cst_62 = arith.constant 0.414213568 : f32
    %174 = vector.broadcast %cst_62 : f32 to vector<8x128xf32>
    %175 = arith.cmpf ogt, %171, %174 : vector<8x128xf32>
    %cst_63 = arith.constant dense<true> : vector<8x128xi1>
    %176 = arith.xori %173, %cst_63 : vector<8x128xi1>
    %177 = arith.andi %175, %176 : vector<8x128xi1>
    %cst_64 = arith.constant 1.000000e-30 : f32
    %178 = vector.broadcast %cst_64 : f32 to vector<8x128xf32>
    %179 = arith.maximumf %171, %178 : vector<8x128xf32>
    %cst_65 = arith.constant -1.000000e+00 : f32
    %180 = vector.broadcast %cst_65 : f32 to vector<8x128xf32>
    %181 = arith.divf %180, %179 : vector<8x128xf32>
    %cst_66 = arith.constant 1.000000e+00 : f32
    %182 = vector.broadcast %cst_66 : f32 to vector<8x128xf32>
    %183 = arith.subf %171, %182 : vector<8x128xf32>
    %cst_67 = arith.constant 1.000000e+00 : f32
    %184 = vector.broadcast %cst_67 : f32 to vector<8x128xf32>
    %185 = arith.addf %171, %184 : vector<8x128xf32>
    %186 = arith.divf %183, %185 : vector<8x128xf32>
    %187 = arith.select %177, %186, %171 : vector<8x128xi1>, vector<8x128xf32>
    %188 = arith.select %173, %181, %187 : vector<8x128xi1>, vector<8x128xf32>
    %cst_68 = arith.constant 0.785398185 : f32
    %cst_69 = arith.constant 0.000000e+00 : f32
    %189 = vector.broadcast %cst_68 : f32 to vector<8x128xf32>
    %190 = vector.broadcast %cst_69 : f32 to vector<8x128xf32>
    %191 = arith.select %177, %189, %190 : vector<8x128xi1>, vector<8x128xf32>
    %cst_70 = arith.constant 1.57079637 : f32
    %192 = vector.broadcast %cst_70 : f32 to vector<8x128xf32>
    %193 = arith.select %173, %192, %191 : vector<8x128xi1>, vector<8x128xf32>
    %194 = arith.mulf %188, %188 : vector<8x128xf32>
    %cst_71 = arith.constant 0.0805374458 : f32
    %195 = vector.broadcast %cst_71 : f32 to vector<8x128xf32>
    %196 = arith.mulf %195, %194 : vector<8x128xf32>
    %cst_72 = arith.constant 0.138776854 : f32
    %197 = vector.broadcast %cst_72 : f32 to vector<8x128xf32>
    %198 = arith.subf %196, %197 : vector<8x128xf32>
    %199 = arith.mulf %198, %194 : vector<8x128xf32>
    %cst_73 = arith.constant 0.199777111 : f32
    %200 = vector.broadcast %cst_73 : f32 to vector<8x128xf32>
    %201 = arith.addf %199, %200 : vector<8x128xf32>
    %202 = arith.mulf %201, %194 : vector<8x128xf32>
    %cst_74 = arith.constant 0.333329499 : f32
    %203 = vector.broadcast %cst_74 : f32 to vector<8x128xf32>
    %204 = arith.subf %202, %203 : vector<8x128xf32>
    %205 = arith.mulf %204, %194 : vector<8x128xf32>
    %206 = arith.mulf %205, %188 : vector<8x128xf32>
    %207 = arith.addf %206, %188 : vector<8x128xf32>
    %208 = arith.addf %193, %207 : vector<8x128xf32>
    %209 = arith.subf %170, %208 : vector<8x128xf32>
    %210 = arith.mulf %209, %209 : vector<8x128xf32>
    %cst_75 = arith.constant 0.405284733 : f32
    %211 = vector.broadcast %cst_75 : f32 to vector<8x128xf32>
    %212 = arith.mulf %211, %210 : vector<8x128xf32>
    %213 = arith.subf %212, %110 : vector<8x128xf32>
    %cst_76 = arith.constant 1.00000012 : f32
    %214 = vector.broadcast %cst_76 : f32 to vector<8x128xf32>
    %215 = arith.addf %213, %214 : vector<8x128xf32>
    %216 = arith.divf %212, %215 : vector<8x128xf32>
    %217 = arith.divf %132, %121 : vector<8x128xf32>
    %218 = arith.mulf %212, %216 : vector<8x128xf32>
    %219 = arith.addf %217, %218 : vector<8x128xf32>
    %220 = arith.subf %110, %219 : vector<8x128xf32>
    %cst_77 = arith.constant 0.000000e+00 : f32
    %221 = vector.broadcast %cst_77 : f32 to vector<8x128xf32>
    %222 = arith.maximumf %220, %221 : vector<8x128xf32>
    %c0_78 = arith.constant 0 : index
    %c0_79 = arith.constant 0 : index
    %223 = vector.load %arg2[%c0_78, %c0_79] : memref<8x128xf32, #tpu.memory_space<vmem>>, vector<8x128xf32>
    tpu.vector_store %arg2[%c0_78, %c0_79], %222 {strides = array<i32>} : memref<8x128xf32, #tpu.memory_space<vmem>>, vector<8x128xf32>,
    %cst_80 = arith.constant 1.000000e+00 : f32
    %224 = vector.broadcast %cst_80 : f32 to vector<8x128xf32>
    %225 = arith.subf %224, %220 : vector<8x128xf32>
    %226 = arith.mulf %225, %60 : vector<8x128xf32>
    %cst_81 = arith.constant dense<0.000000e+00> : vector<8xf32>
    %227 = vector.multi_reduction <add>, %226, %cst_81 [1] : vector<8x128xf32> to vector<8xf32>
    %228 = vector.shape_cast %227 : vector<8xf32> to vector<8x1xf32>
    %cst_82 = arith.constant dense<0.000000e+00> : vector<1xf32>
    %229 = vector.multi_reduction <add>, %228, %cst_82 [0] : vector<8x1xf32> to vector<1xf32>
    %230 = vector.shape_cast %229 : vector<1xf32> to vector<1x1xf32>
    %c0_83 = arith.constant 0 : index
    %c0_84 = arith.constant 0 : index
    %231 = vector.load %arg4[%c0_83, %c0_84] : memref<1x1xf32, #tpu.memory_space<vmem>>, vector<1x1xf32>
    %232 = arith.addf %231, %230 : vector<1x1xf32>
    %c0_85 = arith.constant 0 : index
    %c0_86 = arith.constant 0 : index
    %233 = vector.load %arg4[%c0_85, %c0_86] : memref<1x1xf32, #tpu.memory_space<vmem>>, vector<1x1xf32>
    tpu.vector_store %arg4[%c0_85, %c0_86], %232 {strides = array<i32>} : memref<1x1xf32, #tpu.memory_space<vmem>>, vector<1x1xf32>,
    %c0_i32_87 = arith.constant 0 : i32
    %234 = arith.cmpi eq, %arg0, %c0_i32_87 : i32
    %235 = arith.extui %234 : i1 to i32
    %c0_i32_88 = arith.constant 0 : i32
    %236 = arith.cmpi ne, %235, %c0_i32_88 : i32
    scf.if %236 {
      %c0_89 = arith.constant 0 : index
      %c0_90 = arith.constant 0 : index
      %237 = vector.load %arg4[%c0_89, %c0_90] : memref<1x1xf32, #tpu.memory_space<vmem>>, vector<1x1xf32>
      %c0_91 = arith.constant 0 : index
      %c0_92 = arith.constant 0 : index
      %238 = vector.load %arg3[%c0_91, %c0_92] : memref<1x1xf32, #tpu.memory_space<vmem>>, vector<1x1xf32>
      tpu.vector_store %arg3[%c0_91, %c0_92], %237 {strides = array<i32>} : memref<1x1xf32, #tpu.memory_space<vmem>>, vector<1x1xf32>,
    } else {
    }
    return
  }
  func.func @transform_0(%arg0: i32) -> (i32, i32, i32) {
    %c0_i32 = arith.constant 0 : i32
    %c0_i32_0 = arith.constant 0 : i32
    %c0_i32_1 = arith.constant 0 : i32
    return %c0_i32, %arg0, %c0_i32_0 : i32, i32, i32
  }
  func.func @transform_1(%arg0: i32) -> (i32, i32) {
    %c0_i32 = arith.constant 0 : i32
    %c0_i32_0 = arith.constant 0 : i32
    return %arg0, %c0_i32 : i32, i32
  }
  func.func @transform_2(%arg0: i32) -> (i32, i32) {
    %c0_i32 = arith.constant 0 : i32
    %c0_i32_0 = arith.constant 0 : i32
    %c0_i32_1 = arith.constant 0 : i32
    return %c0_i32, %c0_i32_0 : i32, i32
  }
}

</mosaic_0001>

<bundles_post_ra>
// kernel: tpu_custom_call.1
= control target key start
LH: loop header
LB: loop body
LE: loop exit
PB: predicated region body
PF: predicated region fallthrough
CT: control target
= control target key end

     0   :  { %8 = vsyncpa [#allocation4], 0  ;;  %s540_s0 = inlined_call_operand.hbm [shape: f32[11,8,128], index: 0, kind: input, shape index: {}]   ;;  %s541_s1 = inlined_call_operand.hbm [shape: f32[8,128], index: 1, kind: output, shape index: {0}]   ;;  %s542_s2 = inlined_call_operand.hbm [shape: f32[1,1], index: 2, kind: output, shape index: {1}]  }
   0x1   :  { %9 = vsyncpa [#allocation5], 0 }
   0x2   :  { %10 = vsyncpa [#allocation8], 0  ;;  %s384_s9 = smov [#allocation3]   ;;  %s312_s13 = scalar_lea.hbm %s540_s0, 1408 }
   0x3   :  { %s16_s10 = sshll.u32 %s384_s9, 4  ;;  %p313_p0 = scmp.ne.s32.totalorder %s540_s0, %s312_s13  ;;  %s17_s10 = int_to_ptr.vmem [resolvable:$true] %s16_s10 }
   0x4   :  { %p316_p1 = scmp.lt.u32.totalorder %s312_s13, %s540_s0 }
   0x6   :  { %p318_p2 = pnand %p316_p1, %p313_p0 }
   0x8   :  { %321 = shalt.err (!%p318_p2)
}
   0x9   :  { %s322_s18 = scalar_lea.vmem %s17_s10, 1408  ;;  %p327_p4 = scmp.lt.s32.totalorder %s17_s10, %s17_s10 }
   0xa   :  { %p323_p3 = scmp.ne.s32.totalorder %s17_s10, %s322_s18  ;;  %p328_p5 = scmp.lt.s32.totalorder %s322_s18, %s322_s18 }
   0xc   :  { %p329_p6 = por %p328_p5, %p327_p4 }
   0xe   :  { %p330_p7 = pnand %p329_p6, %p323_p3 }
  0x10   :  { %333 = shalt.err (!%p330_p7)
}
  0x11   :  { %s385_s19 = smov 128   ;;  %s386_s20 = smov 8  }
  0x12   :  { %22 = dma.hbm_to_vmem [thread:$0]  %s540_s0, 1408, %s17_s10, [#allocation4], %s385_s19, %s385_s19, %s386_s20  }
  0x13   :  { %378 = dma.done.wait [#allocation4], 1408  }
  0x14   :  { %379 = vsyncadd [#allocation4], 4294965888  ;;  %v42_v0 = vld [vmem:[#allocation3 + $0x8] sm:$0xff]  ;;  %v52_v1 = vld [vmem:[#allocation3 + $0x10] sm:$0xff]  ;;  %vm387_vm2 = vmmov 1   ;;  %vm30_vm9 = vcmask 0  }
  0x15   :  { %v261_v2 = vmul.f32 -1.442695, %v42_v0  ;;  %v263_v3 = vmul.f32 -1.442695, %v52_v1  ;;  %v65_v4 = vld [vmem:[#allocation3 + $0x18] sm:$0xff]  ;;  %v32_v5 = vld [vmem:[#allocation3] sm:$0xff] }
  0x16   :  { %v264_v6 = vmul.f32 -1.442695, %v65_v4  ;;  %v80_v7 = vld [vmem:[#allocation3 + $0x38] sm:$0xff]  ;;  %v84_v8 = vld [vmem:[#allocation3 + $0x48] sm:$0xff]  ;;  %v259_v10 = vmul.f32 -1.442695, %v32_v5 }
  0x17   :  { %278 = vpow2.f32 %v261_v2  ;;  %v96_v9 = vmul.f32 0.5, %v84_v8  ;;  %v82_v13 = vld [vmem:[#allocation3 + $0x40] sm:$0xff]  ;;  %v78_v18 = vld [vmem:[#allocation3 + $0x30] sm:$0xff]  ;;  %v75_v39 = vld [vmem:[#allocation3 + $0x28] sm:$0xff]  ;;  %s389_s0 = smov [#allocation6]  }
  0x18   :  { %280 = vpow2.f32 %v263_v3  ;;  %v93_v17 = vmul.f32 0.5, %v82_v13  ;;  %v62_v47 = vld [vmem:[#allocation3 + $0x20] sm:$0xff]  ;;  %s236_s23 = sshll.u32 %s389_s0, 4  ;;  %s237_s23 = int_to_ptr.vmem [resolvable:$true] %s236_s23 }
  0x19   :  { %282 = vpow2.f32 %v264_v6  ;;  %v418_v11 = vsub.f32 %v80_v7, %v96_v9  ;;  %v420_v12 = vadd.f32 %v96_v9, %v80_v7  ;;  %s334_s24 = scalar_lea.vmem %s237_s23, 128  ;;  %p339_p9 = scmp.lt.s32.totalorder %s237_s23, %s237_s23 }
  0x1a   :  { %284 = vpow2.f32 %v259_v10  ;;  %v429_v24 = vsub.f32 %v78_v18, %v93_v17  ;;  %v431_v25 = vadd.f32 %v93_v17, %v78_v18  ;;  %p335_p8 = scmp.ne.s32.totalorder %s237_s23, %s334_s24  ;;  %p340_p10 = scmp.lt.s32.totalorder %s334_s24, %s334_s24 }
  0x1b   :  { %v112_v14 = vsub.f32 %v420_v12, %v418_v11  ;;  %v135_v15 = vadd.f32 %v420_v12, %v418_v11 }
  0x1c   :  { %v435_v28 = vsub.f32 %v431_v25, %v429_v24  ;;  %v131_v61 = vadd.f32 %v431_v25, %v429_v24  ;;  %p341_p11 = por %p340_p10, %p339_p9 }
  0x1d   :  { %v426_v16 = vadd.f32 1e-07, %v112_v14 }
  0x1e   :  { %p342_p12 = pnand %p341_p11, %p335_p8 }
  0x1f   :  { %286 = vrcp.f32 %v426_v16 }
  0x21   :  { %v279_v19 = vpop.eup %278 }
  0x22   :  { %v281_v20 = vpop.eup %280  ;;  %v46_v21 = vadd.f32 1.0, %v279_v19 }
  0x23   :  { %v283_v22 = vpop.eup %282  ;;  %v56_v23 = vadd.f32 1.0, %v281_v20 }
  0x24   :  { %288 = vrcp.f32 %v46_v21  ;;  %v69_v26 = vadd.f32 1.0, %v283_v22  ;;  %v285_v27 = vpop.eup %284 }
  0x25   :  { %290 = vrcp.f32 %v56_v23  ;;  %v36_v30 = vadd.f32 1.0, %v285_v27 }
  0x26   :  { %292 = vrcp.f32 %v69_v26  ;;  %v115_v26 = vmul.f32 %v426_v16, %v435_v28 }
  0x27   :  { %294 = vrcp.f32 %v36_v30 }
  0x29   :  { %v287_v29 = vpop.eup %286 }
  0x2a   :  { %v438_v31 = vmul.f32 %v287_v29, %v435_v28 }
  0x2c   :  { %v151_v34 = vadd.f32 1.0, %v438_v31  ;;  %v147_v38 = vmax.f32 %v438_v31, 1e-30  ;;  %vm143_vm0 = vcmp.gt.f32.partialorder %v438_v31, 2.4142137  ;;  %v265_v53 = vadd.f32 -1.0, %v438_v31 }
  0x2d   :  { %vm144_vm1 = vcmp.gt.f32.partialorder %v438_v31, 0.41421357  ;;  %vm145_vm3 = vmxor %vm143_vm0, %vm387_vm2 }
  0x2e   :  { %v289_v32 = vpop.eup %288  ;;  %296 = vrcp.f32 %v151_v34  ;;  %vm458_vm4 = vmand %vm144_vm1, %vm145_vm3  ;;  %v86_v34 = vld [vmem:[#allocation3 + $0x50] sm:$0xff] }
  0x2f   :  { %v291_v33 = vpop.eup %290  ;;  %v49_v36 = vmul.f32 2.0, %v289_v32  ;;  %298 = vrcp.f32 %v147_v38 }
  0x30   :  { %v293_v35 = vpop.eup %292  ;;  %v59_v40 = vmul.f32 2.0, %v291_v33 }
  0x31   :  { %v72_v37 = vmul.f32 2.0, %v293_v35  ;;  %v262_v42 = vadd.f32 -0.5, %v49_v36  ;;  %v295_v46 = vpop.eup %294 }
  0x32   :  { %v60_v44 = vmul.f32 %v59_v40, %v59_v40  ;;  %v39_v50 = vmul.f32 2.0, %v295_v46 }
  0x33   :  { %v73_v41 = vmul.f32 %v72_v37, %v72_v37 }
  0x34   :  { %v63_v51 = vmul.f32 %v62_v47, %v60_v44  ;;  %v260_v58 = vadd.f32 -0.5, %v39_v50 }
  0x35   :  { %v76_v43 = vmul.f32 %v75_v39, %v73_v41 }
  0x36   :  { %v87_v59 = vmul.f32 0.5, %v63_v51 }
  0x37   :  { %v90_v45 = vmul.f32 0.5, %v76_v43 }
  0x38   :  { %v297_v54 = vpop.eup %296  ;;  %v462_v0 = vsub.f32 %v260_v58, %v87_v59  ;;  %v464_v1 = vadd.f32 %v260_v58, %v87_v59 }
  0x39   :  { %v442_v48 = vsub.f32 %v262_v42, %v90_v45  ;;  %v444_v49 = vadd.f32 %v262_v42, %v90_v45  ;;  %v299_v57 = vpop.eup %298  ;;  %v153_v62 = vmul.f32 %v297_v54, %v265_v53 }
  0x3a   :  { %v149_v63 = vmul.f32 -1.0, %v299_v57  ;;  %v108_v4 = vsub.f32 %v464_v1, %v462_v0  ;;  %v99_v14 = vmin.f32 %v464_v1, %v431_v25  ;;  %v121_v51 = vmax.f32 %v464_v1, %v431_v25 }
  0x3b   :  { %v109_v52 = vsub.f32 %v444_v49, %v442_v48  ;;  %v136_v56 = vsub.f32 %v135_v15, %v442_v48  ;;  %v154_v2 = vsel %vm458_vm4, %v153_v62, %v438_v31  ;;  %v100_v15 = vmax.f32 %v462_v0, %v429_v24 }
  0x3c   :  { %v155_v3 = vsel %vm143_vm0, %v149_v63, %v154_v2  ;;  %v103_v17 = vmin.f32 %v444_v49, %v420_v12  ;;  %v104_v18 = vmax.f32 %v442_v48, %v418_v11  ;;  %v124_v53 = vmax.f32 %v444_v49, %v420_v12 }
  0x3d   :  { %v110_v55 = vadd.f32 1e-07, %v109_v52  ;;  %v456_v60 = vsub.f32 %v136_v56, %v444_v49  ;;  %v158_v5 = vmul.f32 %v155_v3, %v155_v3  ;;  %v101_v20 = vsub.f32 %v99_v14, %v100_v15 }
  0x3e   :  { %v105_v21 = vsub.f32 %v103_v17, %v104_v18  ;;  %v122_v52 = vmin.f32 %v462_v0, %v429_v24  ;;  %v125_v54 = vmin.f32 %v442_v48, %v418_v11  ;;  %v388_v57 = vmov 0.0  }
  0x3f   :  { %300 = vrcp.f32 %v110_v55  ;;  %v159_v8 = vmul.f32 0.080537446, %v158_v5  ;;  %v102_v30 = vmax.f32 %v101_v20, 0.0  ;;  %v114_v33 = vmul.f32 %v110_v55, %v108_v4  ;;  %31 = vst.msk [vmem:[#allocation2] sm:$0x1] %vm30_vm9, %v388_v57 }
  0x40   :  { %v106_v32 = vmax.f32 %v105_v21, 0.0  ;;  %v156_v58 = vsel %vm458_vm4, 0.7853982, %v388_v57  ;;  %v123_v62 = vsub.f32 %v121_v51, %v122_v52  ;;  %v126_v63 = vsub.f32 %v124_v53, %v125_v54 }
  0x41   :  { %v266_v13 = vadd.f32 -0.13877685, %v159_v8  ;;  %v116_v40 = vadd.f32 %v115_v26, %v114_v33  ;;  %v157_v12 = vsel %vm143_vm0, 1.5707964, %v156_v58  ;;  %v132_v15 = vsub.f32 %v131_v61, %v462_v0 }
  0x42   :  { %v107_v39 = vmul.f32 %v106_v32, %v102_v30  ;;  %v127_v48 = vmul.f32 %v123_v62, %v123_v62 }
  0x43   :  { %v161_v19 = vmul.f32 %v266_v13, %v158_v5 }
  0x44   :  { %v117_v43 = vsub.f32 %v116_v40, %v107_v39 }
  0x45   :  { %v162_v27 = vadd.f32 0.19977711, %v161_v19 }
  0x46   :  { %v118_v47 = vadd.f32 1e-07, %v117_v43 }
  0x47   :  { %v163_v37 = vmul.f32 %v162_v27, %v158_v5 }
  0x49   :  { %v301_v6 = vpop.eup %300  ;;  %v267_v28 = vadd.f32 -0.3333295, %v163_v37 }
  0x4a   :  { %v170_v7 = vmul.f32 %v301_v6, %v108_v4  ;;  %v128_v6 = vmul.f32 %v126_v63, %v126_v63 }
  0x4b   :  { %v165_v45 = vmul.f32 %v267_v28, %v158_v5 }
  0x4c   :  { %v175_v9 = vmax.f32 %v170_v7, 1e-30  ;;  %v179_v10 = vadd.f32 1.0, %v170_v7  ;;  %vm171_vm5 = vcmp.gt.f32.partialorder %v170_v7, 2.4142137  ;;  %v268_v22 = vadd.f32 -1.0, %v170_v7 }
  0x4d   :  { %vm172_vm6 = vcmp.gt.f32.partialorder %v170_v7, 0.41421357  ;;  %vm173_vm7 = vmxor %vm171_vm5, %vm387_vm2  ;;  %v166_v55 = vmul.f32 %v165_v45, %v155_v3 }
  0x4e   :  { %302 = vrcp.f32 %v175_v9  ;;  %vm485_vm8 = vmand %vm172_vm6, %vm173_vm7 }
  0x4f   :  { %304 = vrcp.f32 %v179_v10  ;;  %v167_v2 = vadd.f32 %v166_v55, %v155_v3  ;;  %v184_v4 = vsel %vm485_vm8, 0.7853982, %v388_v57  ;;  %v129_v3 = vadd.f32 %v128_v6, %v127_v48 }
  0x50   :  { %306 = vrcp.f32 %v118_v47  ;;  %v185_v11 = vsel %vm171_vm5, 1.5707964, %v184_v4 }
  0x51   :  { %v168_v8 = vadd.f32 %v167_v2, %v157_v12  ;;  %v130_v31 = vadd.f32 1e-07, %v129_v3 }
  0x53   :  { %308 = vrcp.f32 %v130_v31 }
  0x58   :  { %v303_v23 = vpop.eup %302 }
  0x59   :  { %v305_v29 = vpop.eup %304  ;;  %v177_v35 = vmul.f32 -1.0, %v303_v23  ;;  %v138_v23 = vmul.f32 %v456_v60, %v456_v60 }
  0x5a   :  { %v181_v36 = vmul.f32 %v305_v29, %v268_v22  ;;  %v307_v13 = vpop.eup %306 }
  0x5b   :  { %v120_v17 = vmul.f32 %v307_v13, %v107_v39 }
  0x5c   :  { %v182_v38 = vsel %vm485_vm8, %v181_v36, %v170_v7  ;;  %v133_v7 = vsub.f32 %v132_v15, %v464_v1 }
  0x5d   :  { %v183_v41 = vsel %vm171_vm5, %v177_v35, %v182_v38  ;;  %v309_v26 = vpop.eup %308 }
  0x5e   :  { %v186_v16 = vmul.f32 %v183_v41, %v183_v41  ;;  %v134_v22 = vmul.f32 %v133_v7, %v133_v7 }
  0x60   :  { %v187_v42 = vmul.f32 0.080537446, %v186_v16  ;;  %v139_v24 = vadd.f32 %v138_v23, %v134_v22 }
  0x62   :  { %v269_v44 = vadd.f32 -0.13877685, %v187_v42  ;;  %v140_v25 = vmul.f32 0.25, %v139_v24 }
  0x64   :  { %v189_v46 = vmul.f32 %v269_v44, %v186_v16  ;;  %v205_v0 = vmul.f32 %v309_v26, %v140_v25 }
  0x66   :  { %v190_v50 = vadd.f32 0.19977711, %v189_v46 }
  0x68   :  { %v191_v56 = vmul.f32 %v190_v50, %v186_v16 }
  0x6a   :  { %v270_v59 = vadd.f32 -0.3333295, %v191_v56 }
  0x6c   :  { %v193_v5 = vmul.f32 %v270_v59, %v186_v16 }
  0x6e   :  { %v194_v49 = vmul.f32 %v193_v5, %v183_v41 }
  0x70   :  { %v195_v9 = vadd.f32 %v194_v49, %v183_v41 }
  0x72   :  { %v196_v10 = vadd.f32 %v195_v9, %v185_v11 }
  0x74   :  { %v197_v14 = vsub.f32 %v168_v8, %v196_v10 }
  0x76   :  { %v198_v18 = vmul.f32 %v197_v14, %v197_v14 }
  0x78   :  { %v199_v19 = vmul.f32 0.40528473, %v198_v18 }
  0x7a   :  { %v200_v20 = vsub.f32 %v199_v19, %v120_v17 }
  0x7c   :  { %v201_v21 = vadd.f32 1.0000001, %v200_v20 }
  0x7e   :  { %310 = vrcp.f32 %v201_v21 }
  0x88   :  { %v311_v27 = vpop.eup %310 }
  0x89   :  { %v203_v29 = vmul.f32 %v311_v27, %v199_v19 }
  0x8b   :  { %v206_v30 = vmul.f32 %v203_v29, %v199_v19 }
  0x8d   :  { %v207_v32 = vadd.f32 %v206_v30, %v205_v0 }
  0x8f   :  { %v208_v33 = vsub.f32 %v120_v17, %v207_v32 }
  0x91   :  { %v211_v35 = vsub.f32 1.0, %v208_v33  ;;  %v209_v36 = vmax.f32 %v208_v33, 0.0 }
  0x93   :  { %v212_v1 = vmul.f32 %v211_v35, %v86_v34  ;;  %210 = vst [vmem:[#allocation6] sm:$0xff] %v209_v36 }
  0x95   :  { %213 = vadd.xlane.f32.xlu0 %v212_v1 }
  0x96   :  { %345 = shalt.err (!%p342_p12)
}
  0x97   :  { %s346_s27 = scalar_lea.hbm %s541_s1, 128 }
  0x98   :  { %p347_p13 = scmp.ne.s32.totalorder %s541_s1, %s346_s27  ;;  %p350_p0 = scmp.lt.u32.totalorder %s346_s27, %s541_s1 }
  0x9a   :  { %p352_p1 = pnand %p350_p0, %p347_p13 }
  0x9c   :  { %355 = shalt.err (!%p352_p1)
}
  0x9d   :  { %239 = dma.vmem_to_hbm [thread:$0]  %s237_s23, 128, %s541_s1, [#allocation5]   ;;  %v221_v16 = vld [vmem:[#allocation2] sm:$0x1] }
  0x9e   :  { %s390_s6 = smov [#allocation7]  }
  0x9f   :  { %s246_s7 = sshll.u32 %s390_s6, 4  ;;  %s247_s7 = int_to_ptr.vmem [resolvable:$true] %s246_s7 }
  0xa0   :  { %s356_s8 = scalar_lea.vmem %s247_s7, 16  ;;  %s360_s1 = scalar_lea.vmem %s247_s7, 32 }
  0xa1   :  { %p357_p2 = scmp.ne.s32.totalorder %s247_s7, %s356_s8  ;;  %p361_p3 = scmp.lt.s32.totalorder %s247_s7, %s247_s7 }
  0xa2   :  { %p362_p4 = scmp.lt.s32.totalorder %s360_s1, %s356_s8 }
  0xa4   :  { %p363_p5 = por %p362_p4, %p361_p3 }
  0xa6   :  { %p364_p6 = pnand %p363_p5, %p357_p2 }
 0x122   :  { %v214_v60 = vpop.xlane.xlu0 %213 }
 0x123   :  { %v215_v37 = vrot.slane %v214_v60, 4 }
 0x125   :  { %v216_v38 = vadd.f32 %v215_v37, %v214_v60 }
 0x127   :  { %v217_v39 = vrot.slane %v216_v38, 2 }
 0x129   :  { %v218_v40 = vadd.f32 %v217_v39, %v216_v38 }
 0x12b   :  { %v219_v41 = vrot.slane %v218_v40, 1 }
 0x12d   :  { %v220_v28 = vadd.f32 %v219_v41, %v218_v40 }
 0x12f   :  { %v222_v42 = vadd.f32 %v221_v16, %v220_v28 }
 0x131   :  { %224 = vst.msk [vmem:[#allocation2] sm:$0x1] %vm30_vm9, %v222_v42 }
 0x138   :  { %v228_v43 = vld [vmem:[#allocation2] sm:$0x1] }
 0x139   :  { %229 = vst.msk [vmem:[#allocation7] sm:$0x1] %vm30_vm9, %v228_v43 }
 0x13a   :  { %367 = shalt.err (!%p364_p6)
}
 0x13b   :  { %s368_s11 = scalar_lea.hbm %s542_s2, 16 }
 0x13c   :  { %p369_p7 = scmp.ne.s32.totalorder %s542_s2, %s368_s11  ;;  %p372_p8 = scmp.lt.u32.totalorder %s368_s11, %s542_s2 }
 0x13e   :  { %p374_p9 = pnand %p372_p8, %p369_p7 }
 0x140   :  { %377 = shalt.err (!%p374_p9)
}
 0x141   :  { %249 = dma.vmem_to_hbm [thread:$0]  %s247_s7, 16, %s542_s2, [#allocation8]  }
 0x142   :  { %380 = dma.done.wait [#allocation5], 128  }
 0x143   :  { %381 = vsyncadd [#allocation5], 4294967168 }
 0x144   :  { %382 = dma.done.wait [#allocation8], 16  }
 0x145   :  { %383 = vsyncadd [#allocation8], 4294967280 }
 0x146   :  { %256 = vsyncpa [#allocation4], 1 }
 0x147   :  { %257 = vsyncpa [#allocation5], 1 }
 0x148   :  { %258 = vsyncpa [#allocation8], 1 }

</bundles_post_ra>
